<compile_context>
chip_gen: v7x
topology: tpu7x:2x2x1
jax: 0.10.0
libtpu: 0.0.40
codegen_flags: <defaults>
</compile_context>

<pallas_src>
import functools
import numpy as np

import jax
import jax.numpy as jnp
from jax import lax
from jax.experimental import pallas as pl
from jax.experimental.pallas import tpu as pltpu


# ---------------------------------------------------------------------------
# Host-side introspection (cached).
# ---------------------------------------------------------------------------

def _device_kind():
    try:
        return jax.devices()[0].device_kind.lower()
    except Exception:
        return ""


@functools.lru_cache(maxsize=None)
def _probe_tpu_roll():
    """One-time probe: does pltpu.roll lower for our 4-D lane roll, and with
    which rotation convention?  Returns "np" (out[i] = in[i - shift]),
    "rev" (out[i] = in[i + shift]) or None (fall back to jnp.roll)."""
    try:
        def kernel(x_ref, o_ref):
            o_ref[...] = pltpu.roll(x_ref[...], 8, 3)

        lanes = jnp.arange(128, dtype=jnp.float32)
        x = jnp.broadcast_to(lanes, (2, 3, 2, 128))
        out = pl.pallas_call(
            kernel, out_shape=jax.ShapeDtypeStruct(x.shape, x.dtype))(x)
        v = float(out[0, 0, 0, 0])
        if v == 120.0:
            return "np"
        if v == 8.0:
            return "rev"
        return None
    except Exception:
        return None   # lowering/runtime issue -> jnp.roll (concat) fallback


# ---------------------------------------------------------------------------
# Kernel.
# ---------------------------------------------------------------------------

def _swap_w_halves(v, W, roll_mode):
    """Swap left/right halves of every width-W group along the last (lane)
    axis of `v` (the last axis length L is a multiple of W)."""
    L = v.shape[-1]
    ax = v.ndim - 1
    hm = W // 2
    if W % 2 != 0:                       # odd W: exact floor split (rare path)
        return jnp.concatenate([v[..., hm:], v[..., :hm]], axis=-1)
    use_tpu = roll_mode != "jnp" and L % 128 == 0
    rollfn = pltpu.roll if use_tpu else jnp.roll
    conv = "rev" if (use_tpu and roll_mode == "tpu_rev") else "np"
    if W == L:
        # Whole-axis rotation by exactly L/2: convention-free.
        return rollfn(v, hm, ax)
    # Period-W grouped swap: two full-axis rolls (XLU slot) + one select (VPU),
    # all hidden under the HBM roofline of this copy kernel.
    a = rollfn(v, hm, ax)                # conv "np":  a[j] = v[j - hm]
    b = rollfn(v, L - hm, ax)            # conv "np":  b[j] = v[(j + hm) % L]
    lane = lax.broadcasted_iota(jnp.int32, v.shape, ax)
    second_half = (lane % W) >= hm       # lanes whose source is hm lanes lower
    take_a = second_half if conv == "np" else jnp.logical_not(second_half)
    return jnp.where(take_a, a, b)


def _cutperm_kernel(*refs, jig_h, jig_v, W, blend, two_x, roll_mode):
    """Permute one lane-dense (bn, bc, th, L) block; optionally blend per image."""
    it = iter(refs)
    mask_ref = next(it) if blend else None
    x_ref = next(it)
    base_ref = next(it) if two_x else None
    o_ref = next(it)

    x = x_ref[...]                                        # (bn, bc, th, L)
    perm = x
    if jig_h:                                             # block spans full folded H
        hm = perm.shape[2] // 2
        perm = jnp.concatenate([perm[:, :, hm:, :], perm[:, :, :hm, :]], axis=2)
    if jig_v:
        perm = _swap_w_halves(perm, W, roll_mode)
    if blend:
        m = mask_ref[...]                                 # (bn, 1, 1, 1), {0, 1}
        keep = jnp.broadcast_to(m, x.shape) != 0
        base = base_ref[...] if two_x else x
        o_ref[...] = jnp.where(keep, base, perm).astype(o_ref.dtype)
    else:
        o_ref[...] = perm.astype(o_ref.dtype)


# ---------------------------------------------------------------------------
# Tiling / layout decisions.
# ---------------------------------------------------------------------------

def _fold_factor(H, W, jig_h):
    """How many image rows to fold into one 128-lane row (lane-dense layout)."""
    if not (0 < W < 128 and 128 % W == 0):
        return 1
    k = 128 // W
    while k > 1 and (H % k != 0 or (jig_h and (H // 2) % k != 0)):
        k //= 2
    return k


def _budget_bytes(kind):
    # Per-block VMEM budget.  (Review suggests 6-8 MiB on v7x; we use 4 MiB to
    # keep headroom for in-kernel roll/select temporaries inside v7x's 64 MiB
    # physical VMEM -- the marginal roofline gain from 4 -> 6 MiB is ~3%.)
    if "v7" in kind:
        return 4 << 20
    if "v6" in kind:
        return 3 << 20
    return 2 << 20          # v5e / unknown: stay well inside the 16 MiB default


def _pick_tiling(N, C, Hf, L, itemsize, jig_h, two_tc, budget):
    """(bn, bc, th): images / channels per block and the folded-H tile."""
    plane = Hf * L * itemsize             # one (n, c) plane
    image = C * plane
    bn, bc, th = 1, 1, Hf
    if image <= budget:
        bn = max(1, min(N, budget // image))
        while N % bn:
            bn -= 1
        bc = C
        # v7x only: give the 2nd TensorCore work when the whole batch collapses
        # into one block, but never drop a block below ~2 MiB.
        if (two_tc and N // bn == 1 and C % 2 == 0
                and (bn * image) // 2 >= (2 << 20)):
            bc = C // 2
    elif plane <= budget:
        bc = max(1, budget // plane)
        while C % bc:
            bc -= 1
    else:
        # A single (n, c) plane exceeds the budget: tile along folded H.  Tiles
        # must divide Hf, be sublane aligned (multiple of 8) and -- when the
        # H-half swap is done through the index_map -- divide Hf // 2.
        max_rows = max(1, budget // (L * itemsize))
        cands = [t for t in range(8, Hf, 8)
                 if Hf % t == 0 and (not jig_h or (Hf // 2) % t == 0)]
        fitting = [t for t in cands if t <= max_rows]
        if Hf <= max_rows:
            fitting.append(Hf)
        if fitting:
            th = max(fitting)
        elif cands:
            th = min(cands)
        else:
            th = Hf           # no clean tiling; vmem_limit_bytes is raised below
    return bn, bc, th


# ---------------------------------------------------------------------------
# Wrappers.
# ---------------------------------------------------------------------------

def _cut_perm_impl(x, aug_index, mask=None):
    """perm(x), or where(mask, x, perm(x)) per image when mask is given."""
    N, C, H, W = x.shape
    aug = int(aug_index)
    jig_h = (aug // 2) == 1 and H > 1
    jig_v = (aug % 2) == 1 and W > 1
    blend = mask is not None

    # Identity permutation: blend also collapses to x (m*x + (1-m)*x == x).
    if not (jig_h or jig_v):
        return x

    itemsize = x.dtype.itemsize
    k = _fold_factor(H, W, jig_h)
    Hf, L = H // k, W * k
    xf = x.reshape(N, C, Hf, L) if k > 1 else x

    roll_mode = "jnp"
    if jig_v and L % 128 == 0:
        roll_mode = {"np": "tpu_np", "rev": "tpu_rev"}.get(_probe_tpu_roll(), "jnp")

    kind = _device_kind()
    bn, bc, th = _pick_tiling(N, C, Hf, L, itemsize, jig_h,
                              two_tc=("v7" in kind), budget=_budget_bytes(kind))
    nh = Hf // th
    jig_h_in_kernel = jig_h and nh == 1
    h_shift = nh // 2 if (jig_h and nh > 1) else 0        # index_map half swap
    two_x = blend and h_shift > 0                         # blend also needs the aligned tile
    grid = (N // bn, C // bc, nh)
    block = (bn, bc, th, L)

    in_specs, inputs = [], []
    if blend:
        mask4 = jnp.asarray(mask, jnp.float32).reshape(N, 1, 1, 1)
        in_specs.append(pl.BlockSpec((bn, 1, 1, 1), lambda n, c, h: (n, 0, 0, 0)))
        inputs.append(mask4)
    if h_shift:
        in_specs.append(pl.BlockSpec(
            block, lambda n, c, h, _s=h_shift, _m=nh: (n, c, (h + _s) % _m, 0)))
    else:
        in_specs.append(pl.BlockSpec(block, lambda n, c, h: (n, c, h, 0)))
    inputs.append(xf)
    if two_x:
        in_specs.append(pl.BlockSpec(block, lambda n, c, h: (n, c, h, 0)))
        inputs.append(xf)
    out_spec = pl.BlockSpec(block, lambda n, c, h: (n, c, h, 0))

    block_bytes = bn * bc * th * L * itemsize
    streams = 3 if two_x else 2
    need = 2 * streams * block_bytes          # double-buffered in/out blocks
    need += 3 * block_bytes                   # in-kernel roll/select temporaries
    if blend:
        need += 2 * bn * 4096                 # padded (bn,1,1,1) mask tiles
    cparams = dict(dimension_semantics=("parallel", "parallel", "parallel"))
    if need > (12 << 20):
        cparams["vmem_limit_bytes"] = int(need * 5 // 4)

    cost = pl.CostEstimate(
        flops=0, transcendentals=0,
        bytes_accessed=int(x.size * itemsize * streams + (N * 4 if blend else 0)))

    kernel = functools.partial(
        _cutperm_kernel, jig_h=jig_h_in_kernel, jig_v=jig_v, W=W,
        blend=blend, two_x=two_x, roll_mode=roll_mode)

    out = pl.pallas_call(
        kernel,
        out_shape=jax.ShapeDtypeStruct(xf.shape, x.dtype),
        grid=grid,
        in_specs=in_specs,
        out_specs=out_spec,
        compiler_params=pltpu.CompilerParams(**cparams),
        cost_estimate=cost,
    )(*inputs)
    return out.reshape(N, C, H, W) if k > 1 else out


def cut_perm(x, aug_index=None, *, max_range=4, prob=0.5, key=None):
    """Forward pass of the CutPerm module (same semantics as the PyTorch code)."""
    if aug_index is None:
        # Host-side permutation draw (like np.random.randint in the module) plus
        # a per-image Bernoulli(prob) keep-mask for the blend.  Note: each
        # (aug_index, blend) combination is a separate static kernel variant.
        aug = int(np.random.randint(4))
        if key is None:
            key = jax.random.PRNGKey(int(np.random.randint(2 ** 31 - 1)))
        mask = jax.random.bernoulli(key, prob, (x.shape[0],)).astype(jnp.float32)
        return _cut_perm_impl(x, aug, mask)
    return _cut_perm_impl(x, int(aug_index) % max_range, None)


# ---------------------------------------------------------------------------
# Pure-JAX reference (for testing only).
# ---------------------------------------------------------------------------

def _cutperm_ref(x, aug_index):
    H, W = x.shape[2], x.shape[3]
    h_mid, w_mid = H // 2, W // 2
    out = x
    if aug_index // 2 == 1:
        out = jnp.concatenate([out[:, :, h_mid:, :], out[:, :, :h_mid, :]], axis=2)
    if aug_index % 2 == 1:
        out = jnp.concatenate([out[:, :, :, w_mid:], out[:, :, :, :w_mid]], axis=3)
    return out


if __name__ == "__main__":
    key = jax.random.PRNGKey(0)
    k1, k2, k3 = jax.random.split(key, 3)

    # Small module-consistent shape plus the module's natural CIFAR-like shape
    # (exercises the 32x32 -> (8,128) lane-dense fold).
    x_small = jax.random.normal(k1, (2, 4, 16, 16), dtype=jnp.float32)
    x_cifar = jax.random.normal(k2, (2, 3, 32, 32), dtype=jnp.float32)

    # 1) Explicit aug_index branch (pure permutation, all four cases).
    for x in (x_small, x_cifar):
        for aug in range(4):
            out = jax.block_until_ready(cut_perm(x, aug_index=aug))
            ref = _cutperm_ref(x, aug)
            assert out.shape == x.shape and out.dtype == x.dtype
            assert bool(jnp.array_equal(out, ref)), ("permute", tuple(x.shape), aug)

    # 2) Blend machinery with a deterministic {0,1} mask (image 0 kept, image 1
    #    permuted), against the module's m*x + (1-m)*perm formula (exact).
    mask = jnp.array([1.0, 0.0], dtype=jnp.float32)
    for aug in range(4):
        out = jax.block_until_ready(_cut_perm_impl(x_small, aug, mask))
        m = mask.reshape(-1, 1, 1, 1)
        ref = m * x_small + (1.0 - m) * _cutperm_ref(x_small, aug)
        assert bool(jnp.array_equal(out, ref)), ("blend", aug)

    # 3) Public aug_index=None branch (host-sampled aug + Bernoulli blend): every
    #    output image must equal the original or one of its four permutations.
    out = jax.block_until_ready(cut_perm(x_small, key=k3))
    assert out.shape == x_small.shape and out.dtype == x_small.dtype
    cands = [x_small] + [_cutperm_ref(x_small, a) for a in range(4)]
    for i in range(x_small.shape[0]):
        assert any(bool(jnp.array_equal(out[i], c[i])) for c in cands), ("draw", i)

    print("KERNEL_OK")
</pallas_src>

<mosaic_0001>
module attributes {stable_mosaic.version = 11 : i64} {
  func.func @kernel(%arg0: memref<2x3x2x128xf32, #tpu.memory_space<vmem>>, %arg1: memref<2x3x2x128xf32, #tpu.memory_space<vmem>>) attributes {dimension_semantics = [], scalar_prefetch = 0 : i64, scratch_operands = 0 : i64, tpu.core_type = #tpu.core_type<tc>} {
    %c0 = arith.constant 0 : index
    %c0_0 = arith.constant 0 : index
    %c0_1 = arith.constant 0 : index
    %c0_2 = arith.constant 0 : index
    %0 = vector.load %arg0[%c0, %c0_0, %c0_1, %c0_2] : memref<2x3x2x128xf32, #tpu.memory_space<vmem>>, vector<2x3x2x128xf32>
    %c8_i32 = arith.constant 8 : i32
    %1 = tpu.dynamic_rotate %0 by %c8_i32 dim 3 : vector<2x3x2x128xf32>, i32 -> vector<2x3x2x128xf32>
    %c0_3 = arith.constant 0 : index
    %c0_4 = arith.constant 0 : index
    %c0_5 = arith.constant 0 : index
    %c0_6 = arith.constant 0 : index
    %2 = vector.load %arg1[%c0_3, %c0_4, %c0_5, %c0_6] : memref<2x3x2x128xf32, #tpu.memory_space<vmem>>, vector<2x3x2x128xf32>
    tpu.vector_store %arg1[%c0_3, %c0_4, %c0_5, %c0_6], %1 {strides = array<i32>} : memref<2x3x2x128xf32, #tpu.memory_space<vmem>>, vector<2x3x2x128xf32>,
    return
  }
}

module attributes {stable_mosaic.version = 11 : i64} {
  func.func @_cutperm_kernel(%arg0: i32, %arg1: i32, %arg2: i32, %arg3: memref<2x4x2x128xf32, #tpu.memory_space<vmem>>, %arg4: memref<2x4x2x128xf32, #tpu.memory_space<vmem>>) attributes {dimension_semantics = [#tpu.dimension_semantics<parallel>, #tpu.dimension_semantics<parallel>, #tpu.dimension_semantics<parallel>], iteration_bounds = array<i64: 1, 1, 1>, scalar_prefetch = 0 : i64, scratch_operands = 0 : i64, tpu.core_type = #tpu.core_type<tc>, window_params = [{transform_indices = @transform_0, window_bounds = array<i64: 2, 4, 2, 128>}, {transform_indices = @transform_1, window_bounds = array<i64: 2, 4, 2, 128>}]} {
    %c0 = arith.constant 0 : index
    %c0_0 = arith.constant 0 : index
    %c0_1 = arith.constant 0 : index
    %c0_2 = arith.constant 0 : index
    %0 = vector.load %arg3[%c0, %c0_0, %c0_1, %c0_2] : memref<2x4x2x128xf32, #tpu.memory_space<vmem>>, vector<2x4x2x128xf32>
    %1 = vector.extract_strided_slice %0 {offsets = [0, 0, 0, 120], sizes = [2, 4, 2, 8], strides = [1, 1, 1, 1]} : vector<2x4x2x128xf32> to vector<2x4x2x8xf32>
    %2 = vector.extract_strided_slice %0 {offsets = [0, 0, 0, 0], sizes = [2, 4, 2, 120], strides = [1, 1, 1, 1]} : vector<2x4x2x128xf32> to vector<2x4x2x120xf32>
    %3 = tpu.concatenate %1, %2 in 3 : vector<2x4x2x8xf32>, vector<2x4x2x120xf32> -> vector<2x4x2x128xf32>
    %4 = vector.extract_strided_slice %0 {offsets = [0, 0, 0, 8], sizes = [2, 4, 2, 120], strides = [1, 1, 1, 1]} : vector<2x4x2x128xf32> to vector<2x4x2x120xf32>
    %5 = vector.extract_strided_slice %0 {offsets = [0, 0, 0, 0], sizes = [2, 4, 2, 8], strides = [1, 1, 1, 1]} : vector<2x4x2x128xf32> to vector<2x4x2x8xf32>
    %6 = tpu.concatenate %4, %5 in 3 : vector<2x4x2x120xf32>, vector<2x4x2x8xf32> -> vector<2x4x2x128xf32>
    %7 = tpu.iota {dimensions = array<i32: 3>} : vector<2x4x2x128xi32>
    %c16_i32 = arith.constant 16 : i32
    %c0_i32 = arith.constant 0 : i32
    %8 = arith.cmpi eq, %c16_i32, %c0_i32 : i32
    %c1_i32 = arith.constant 1 : i32
    %9 = arith.select %8, %c1_i32, %c16_i32 : i32
    %10 = vector.broadcast %9 : i32 to vector<2x4x2x128xi32>
    %11 = arith.remsi %7, %10 : vector<2x4x2x128xi32>
    %c0_i32_3 = arith.constant 0 : i32
    %12 = vector.broadcast %c0_i32_3 : i32 to vector<2x4x2x128xi32>
    %13 = arith.cmpi ne, %11, %12 : vector<2x4x2x128xi32>
    %c0_i32_4 = arith.constant 0 : i32
    %14 = vector.broadcast %c0_i32_4 : i32 to vector<2x4x2x128xi32>
    %15 = arith.cmpi slt, %11, %14 : vector<2x4x2x128xi32>
    %c0_i32_5 = arith.constant 0 : i32
    %16 = arith.cmpi slt, %9, %c0_i32_5 : i32
    %17 = vector.broadcast %16 : i1 to vector<2x4x2x128xi1>
    %18 = vector.broadcast %17 : vector<2x4x2x128xi1> to vector<2x4x2x128xi1>
    %19 = arith.xori %15, %18 : vector<2x4x2x128xi1>
    %20 = arith.andi %19, %13 : vector<2x4x2x128xi1>
    %21 = vector.broadcast %9 : i32 to vector<2x4x2x128xi32>
    %22 = arith.addi %11, %21 : vector<2x4x2x128xi32>
    %23 = arith.select %20, %22, %11 : vector<2x4x2x128xi1>, vector<2x4x2x128xi32>
    %c8_i32 = arith.constant 8 : i32
    %24 = vector.broadcast %c8_i32 : i32 to vector<2x4x2x128xi32>
    %25 = arith.cmpi sge, %23, %24 : vector<2x4x2x128xi32>
    %26 = arith.select %25, %3, %6 : vector<2x4x2x128xi1>, vector<2x4x2x128xf32>
    %c0_6 = arith.constant 0 : index
    %c0_7 = arith.constant 0 : index
    %c0_8 = arith.constant 0 : index
    %c0_9 = arith.constant 0 : index
    %27 = vector.load %arg4[%c0_6, %c0_7, %c0_8, %c0_9] : memref<2x4x2x128xf32, #tpu.memory_space<vmem>>, vector<2x4x2x128xf32>
    tpu.vector_store %arg4[%c0_6, %c0_7, %c0_8, %c0_9], %26 {strides = array<i32>} : memref<2x4x2x128xf32, #tpu.memory_space<vmem>>, vector<2x4x2x128xf32>,
    return
  }
  func.func @transform_0(%arg0: i32, %arg1: i32, %arg2: i32) -> (i32, i32, i32, i32) {
    %c0_i32 = arith.constant 0 : i32
    %c0_i32_0 = arith.constant 0 : i32
    return %arg0, %arg1, %arg2, %c0_i32 : i32, i32, i32, i32
  }
  func.func @transform_1(%arg0: i32, %arg1: i32, %arg2: i32) -> (i32, i32, i32, i32) {
    %c0_i32 = arith.constant 0 : i32
    %c0_i32_0 = arith.constant 0 : i32
    return %arg0, %arg1, %arg2, %c0_i32 : i32, i32, i32, i32
  }
}

</mosaic_0001>

<bundles_post_ra>
// kernel: tpu_custom_call.1
= control target key start
LH: loop header
LB: loop body
LE: loop exit
PB: predicated region body
PF: predicated region fallthrough
CT: control target
= control target key end

     0   :  { %6 = vsyncpa [#allocation3], 0  ;;  %s162_s0 = inlined_call_operand.hbm [shape: f32[2,3,2,128], index: 0, kind: input, shape index: {}]   ;;  %s163_s1 = inlined_call_operand.hbm [shape: f32[2,3,2,128], index: 1, kind: output, shape index: {}]  }
   0x1   :  { %7 = vsyncpa [#allocation4], 0  ;;  %s117_s6 = smov [#allocation2]   ;;  %s69_s10 = scalar_lea.hbm %s162_s0, 192 }
   0x2   :  { %s13_s7 = sshll.u32 %s117_s6, 4  ;;  %p70_p0 = scmp.ne.s32.totalorder %s162_s0, %s69_s10  ;;  %s14_s7 = int_to_ptr.vmem [resolvable:$true] %s13_s7 }
   0x3   :  { %p73_p1 = scmp.lt.u32.totalorder %s69_s10, %s162_s0 }
   0x5   :  { %p75_p2 = pnand %p73_p1, %p70_p0 }
   0x7   :  { %78 = shalt.err (!%p75_p2)
}
   0x8   :  { %s79_s15 = scalar_lea.vmem %s14_s7, 192  ;;  %p84_p4 = scmp.lt.s32.totalorder %s14_s7, %s14_s7 }
   0x9   :  { %p80_p3 = scmp.ne.s32.totalorder %s14_s7, %s79_s15  ;;  %p85_p5 = scmp.lt.s32.totalorder %s79_s15, %s79_s15 }
   0xb   :  { %p86_p6 = por %p85_p5, %p84_p4 }
   0xd   :  { %p87_p7 = pnand %p86_p6, %p80_p3 }
   0xf   :  { %90 = shalt.err (!%p87_p7)
}
  0x10   :  { %s118_s16 = smov 32   ;;  %s119_s17 = smov 2  }
  0x11   :  { %19 = dma.hbm_to_vmem [thread:$0]  %s162_s0, 192, %s14_s7, [#allocation3], %s118_s16, %s118_s16, %s119_s17  }
  0x12   :  { %113 = dma.done.wait [#allocation3], 192  }
  0x13   :  { %114 = vsyncadd [#allocation3], 4294967104  ;;  %v25_v0 = vld [vmem:[#allocation2 + $0x4] sm:$0x3]  ;;  %v23_v1 = vld [vmem:[#allocation2] sm:$0x3] }
  0x14   :  { %s120_s20 = smov 8   ;;  %v26_v2 = vld [vmem:[#allocation2 + $0x6] sm:$0x3]  ;;  %v24_v3 = vld [vmem:[#allocation2 + $0x2] sm:$0x3]  ;;  %s121_s0 = smov [#allocation5]  }
  0x15   :  { %33 = vrot.lane.b32.xlu1 %v25_v0, %s120_s20  ;;  %29 = vrot.lane.b32.xlu0 %v23_v1, %s120_s20  ;;  %v28_v4 = vld [vmem:[#allocation2 + $0xa] sm:$0x3]  ;;  %v27_v5 = vld [vmem:[#allocation2 + $0x8] sm:$0x3]  ;;  %s52_s21 = sshll.u32 %s121_s0, 4  ;;  %s53_s21 = int_to_ptr.vmem [resolvable:$true] %s52_s21 }
  0x16   :  { %s91_s22 = scalar_lea.vmem %s53_s21, 192  ;;  %p96_p9 = scmp.lt.s32.totalorder %s53_s21, %s53_s21 }
  0x17   :  { %p92_p8 = scmp.ne.s32.totalorder %s53_s21, %s91_s22  ;;  %p97_p10 = scmp.lt.s32.totalorder %s91_s22, %s91_s22 }
  0x19   :  { %35 = vrot.lane.b32.xlu1 %v26_v2, %s120_s20  ;;  %31 = vrot.lane.b32.xlu0 %v24_v3, %s120_s20  ;;  %p98_p11 = por %p97_p10, %p96_p9 }
  0x1b   :  { %p99_p12 = pnand %p98_p11, %p92_p8 }
  0x1d   :  { %39 = vrot.lane.b32.xlu1 %v28_v4, %s120_s20  ;;  %37 = vrot.lane.b32.xlu0 %v27_v5, %s120_s20 }
  0x87   :  { %v34_v6 = vpop.permute.xlu1 %33  ;;  %v30_v7 = vpop.permute.xlu0 %29 }
  0x88   :  { %43 = vst [vmem:[#allocation5 + $0x4] sm:$0x3] %v34_v6  ;;  %41 = vst [vmem:[#allocation5] sm:$0x3] %v30_v7 }
  0x8b   :  { %v36_v8 = vpop.permute.xlu1 %35  ;;  %v32_v9 = vpop.permute.xlu0 %31 }
  0x8c   :  { %44 = vst [vmem:[#allocation5 + $0x6] sm:$0x3] %v36_v8  ;;  %42 = vst [vmem:[#allocation5 + $0x2] sm:$0x3] %v32_v9 }
  0x8f   :  { %v40_v10 = vpop.permute.xlu1 %39  ;;  %v38_v11 = vpop.permute.xlu0 %37 }
  0x90   :  { %46 = vst [vmem:[#allocation5 + $0xa] sm:$0x3] %v40_v10  ;;  %45 = vst [vmem:[#allocation5 + $0x8] sm:$0x3] %v38_v11 }
  0x91   :  { %102 = shalt.err (!%p99_p12)
}
  0x92   :  { %s103_s25 = scalar_lea.hbm %s163_s1, 192 }
  0x93   :  { %p104_p13 = scmp.ne.s32.totalorder %s163_s1, %s103_s25  ;;  %p107_p0 = scmp.lt.u32.totalorder %s103_s25, %s163_s1 }
  0x95   :  { %p109_p1 = pnand %p107_p0, %p104_p13 }
  0x97   :  { %112 = shalt.err (!%p109_p1)
}
  0x98   :  { %58 = dma.vmem_to_hbm [thread:$0]  %s53_s21, 192, %s163_s1, [#allocation4], %s118_s16, %s118_s16, %s119_s17  }
  0x99   :  { %115 = dma.done.wait [#allocation4], 192  }
  0x9a   :  { %116 = vsyncadd [#allocation4], 4294967104 }
  0x9b   :  { %62 = vsyncpa [#allocation3], 1 }
  0x9c   :  { %63 = vsyncpa [#allocation4], 1 }

// kernel: tpu_custom_call.1
= control target key start
LH: loop header
LB: loop body
LE: loop exit
PB: predicated region body
PF: predicated region fallthrough
CT: control target
= control target key end

     0   :  { %6 = vsyncpa [#allocation3], 0  ;;  %s255_s0 = inlined_call_operand.hbm [shape: f32[2,4,2,128], index: 0, kind: input, shape index: {}]   ;;  %s256_s1 = inlined_call_operand.hbm [shape: f32[2,4,2,128], index: 1, kind: output, shape index: {}]  }
   0x1   :  { %7 = vsyncpa [#allocation4], 0  ;;  %s189_s6 = smov [#allocation2]   ;;  %s141_s10 = scalar_lea.hbm %s255_s0, 256 }
   0x2   :  { %s13_s7 = sshll.u32 %s189_s6, 4  ;;  %p142_p0 = scmp.ne.s32.totalorder %s255_s0, %s141_s10  ;;  %s14_s7 = int_to_ptr.vmem [resolvable:$true] %s13_s7 }
   0x3   :  { %p145_p1 = scmp.lt.u32.totalorder %s141_s10, %s255_s0 }
   0x5   :  { %p147_p2 = pnand %p145_p1, %p142_p0 }
   0x7   :  { %150 = shalt.err (!%p147_p2)
}
   0x8   :  { %s151_s15 = scalar_lea.vmem %s14_s7, 256  ;;  %p156_p4 = scmp.lt.s32.totalorder %s14_s7, %s14_s7 }
   0x9   :  { %p152_p3 = scmp.ne.s32.totalorder %s14_s7, %s151_s15  ;;  %p157_p5 = scmp.lt.s32.totalorder %s151_s15, %s151_s15 }
   0xb   :  { %p158_p6 = por %p157_p5, %p156_p4 }
   0xd   :  { %p159_p7 = pnand %p158_p6, %p152_p3 }
   0xf   :  { %162 = shalt.err (!%p159_p7)
}
  0x10   :  { %s190_s16 = smov 32   ;;  %s191_s17 = smov 2  }
  0x11   :  { %19 = dma.hbm_to_vmem [thread:$0]  %s255_s0, 256, %s14_s7, [#allocation3], %s190_s16, %s190_s16, %s191_s17  }
  0x12   :  { %185 = dma.done.wait [#allocation3], 256  }
  0x13   :  { %186 = vsyncadd [#allocation3], 4294967040  ;;  %v25_v0 = vld [vmem:[#allocation2 + $0x4] sm:$0x3]  ;;  %v23_v1 = vld [vmem:[#allocation2] sm:$0x3]  ;;  %v87_v10 = vlaneseq }
  0x14   :  { %s192_s20 = smov 8   ;;  %v26_v2 = vld [vmem:[#allocation2 + $0x6] sm:$0x3]  ;;  %v24_v3 = vld [vmem:[#allocation2 + $0x2] sm:$0x3]  ;;  %s193_s0 = smov 120  }
  0x15   :  { %43 = vrot.lane.b32.xlu1 %v25_v0, %s192_s20  ;;  %39 = vrot.lane.b32.xlu0 %v23_v1, %s192_s20  ;;  %v28_v4 = vld [vmem:[#allocation2 + $0xa] sm:$0x3]  ;;  %v27_v5 = vld [vmem:[#allocation2 + $0x8] sm:$0x3]  ;;  %v30_v6 = vld [vmem:[#allocation2 + $0xe] sm:$0x3] }
  0x16   :  { %v29_v7 = vld [vmem:[#allocation2 + $0xc] sm:$0x3]  ;;  %v88_v13 = vand.u32 127, %v87_v10  ;;  %s194_s21 = smov [#allocation5]  }
  0x17   :  { %s123_s22 = sshll.u32 %s194_s21, 4  ;;  %s124_s22 = int_to_ptr.vmem [resolvable:$true] %s123_s22 }
  0x18   :  { %v93_v16 = vand.u32 15, %v88_v13  ;;  %s163_s23 = scalar_lea.vmem %s124_s22, 256  ;;  %p168_p9 = scmp.lt.s32.totalorder %s124_s22, %s124_s22 }
  0x19   :  { %45 = vrot.lane.b32.xlu1 %v26_v2, %s192_s20  ;;  %41 = vrot.lane.b32.xlu0 %v24_v3, %s192_s20  ;;  %p164_p8 = scmp.ne.s32.totalorder %s124_s22, %s163_s23  ;;  %p169_p10 = scmp.lt.s32.totalorder %s163_s23, %s163_s23 }
  0x1a   :  { %vm220_vm0 = vcmp.ge.s32.totalorder %v93_v16, 8 }
  0x1b   :  { %p170_p11 = por %p169_p10, %p168_p9 }
  0x1d   :  { %49 = vrot.lane.b32.xlu1 %v28_v4, %s192_s20  ;;  %47 = vrot.lane.b32.xlu0 %v27_v5, %s192_s20  ;;  %p171_p12 = pnand %p170_p11, %p164_p8 }
  0x21   :  { %53 = vrot.lane.b32.xlu1 %v30_v6, %s192_s20  ;;  %51 = vrot.lane.b32.xlu0 %v29_v7, %s192_s20 }
  0x25   :  { %65 = vrot.lane.b32.xlu1 %v24_v3, %s193_s0  ;;  %63 = vrot.lane.b32.xlu0 %v23_v1, %s193_s0 }
  0x29   :  { %69 = vrot.lane.b32.xlu1 %v26_v2, %s193_s0  ;;  %67 = vrot.lane.b32.xlu0 %v25_v0, %s193_s0 }
  0x2d   :  { %73 = vrot.lane.b32.xlu1 %v28_v4, %s193_s0  ;;  %71 = vrot.lane.b32.xlu0 %v27_v5, %s193_s0 }
  0x31   :  { %77 = vrot.lane.b32.xlu1 %v30_v6, %s193_s0  ;;  %75 = vrot.lane.b32.xlu0 %v29_v7, %s193_s0 }
  0x87   :  { %v44_v8 = vpop.permute.xlu1 %43  ;;  %v40_v9 = vpop.permute.xlu0 %39 }
  0x8b   :  { %v46_v11 = vpop.permute.xlu1 %45  ;;  %v42_v12 = vpop.permute.xlu0 %41 }
  0x8f   :  { %v50_v14 = vpop.permute.xlu1 %49  ;;  %v48_v15 = vpop.permute.xlu0 %47 }
  0x93   :  { %v54_v17 = vpop.permute.xlu1 %53  ;;  %v52_v18 = vpop.permute.xlu0 %51 }
  0x97   :  { %v66_v20 = vpop.permute.xlu1 %65  ;;  %v64_v21 = vpop.permute.xlu0 %63 }
  0x98   :  { %v103_v22 = vsel %vm220_vm0, %v42_v12, %v66_v20  ;;  %v102_v23 = vsel %vm220_vm0, %v40_v9, %v64_v21 }
  0x99   :  { %111 = vst [vmem:[#allocation5 + $0x2] sm:$0x3] %v103_v22  ;;  %110 = vst [vmem:[#allocation5] sm:$0x3] %v102_v23 }
  0x9b   :  { %v70_v24 = vpop.permute.xlu1 %69  ;;  %v68_v25 = vpop.permute.xlu0 %67 }
  0x9c   :  { %v105_v26 = vsel %vm220_vm0, %v46_v11, %v70_v24  ;;  %v104_v27 = vsel %vm220_vm0, %v44_v8, %v68_v25 }
  0x9d   :  { %113 = vst [vmem:[#allocation5 + $0x6] sm:$0x3] %v105_v26  ;;  %112 = vst [vmem:[#allocation5 + $0x4] sm:$0x3] %v104_v27 }
  0x9f   :  { %v74_v28 = vpop.permute.xlu1 %73  ;;  %v72_v29 = vpop.permute.xlu0 %71 }
  0xa0   :  { %v107_v30 = vsel %vm220_vm0, %v50_v14, %v74_v28  ;;  %v106_v31 = vsel %vm220_vm0, %v48_v15, %v72_v29 }
  0xa1   :  { %115 = vst [vmem:[#allocation5 + $0xa] sm:$0x3] %v107_v30  ;;  %114 = vst [vmem:[#allocation5 + $0x8] sm:$0x3] %v106_v31 }
  0xa3   :  { %v78_v32 = vpop.permute.xlu1 %77  ;;  %v76_v33 = vpop.permute.xlu0 %75 }
  0xa4   :  { %v109_v34 = vsel %vm220_vm0, %v54_v17, %v78_v32  ;;  %v108_v35 = vsel %vm220_vm0, %v52_v18, %v76_v33 }
  0xa5   :  { %117 = vst [vmem:[#allocation5 + $0xe] sm:$0x3] %v109_v34  ;;  %116 = vst [vmem:[#allocation5 + $0xc] sm:$0x3] %v108_v35 }
  0xa6   :  { %174 = shalt.err (!%p171_p12)
}
  0xa7   :  { %s175_s26 = scalar_lea.hbm %s256_s1, 256 }
  0xa8   :  { %p176_p13 = scmp.ne.s32.totalorder %s256_s1, %s175_s26  ;;  %p179_p0 = scmp.lt.u32.totalorder %s175_s26, %s256_s1 }
  0xaa   :  { %p181_p1 = pnand %p179_p0, %p176_p13 }
  0xac   :  { %184 = shalt.err (!%p181_p1)
}
  0xad   :  { %129 = dma.vmem_to_hbm [thread:$0]  %s124_s22, 256, %s256_s1, [#allocation4], %s190_s16, %s190_s16, %s191_s17  }
  0xae   :  { %187 = dma.done.wait [#allocation4], 256  }
  0xaf   :  { %188 = vsyncadd [#allocation4], 4294967040 }
  0xb0   :  { %133 = vsyncpa [#allocation3], 1 }
  0xb1   :  { %134 = vsyncpa [#allocation4], 1 }

</bundles_post_ra>
